<compile_context>
chip_gen: v7x
topology: tpu7x:2x2x1
jax: 0.10.0
libtpu: 0.0.40
codegen_flags: <defaults>
</compile_context>

<pallas_src>
import functools
import math

import jax
import jax.numpy as jnp
from jax.experimental import pallas as pl
from jax.experimental.pallas import tpu as pltpu


def _layernorm_kernel(x_ref, g_ref, b_ref, o_ref, *, eps, features):
    """Plain path: one logical row per kernel row. Block: (tile_rows, features)."""
    x = x_ref[...].astype(jnp.float32)

    inv_n = jnp.float32(1.0 / features)
    inv_nm1 = jnp.float32(1.0 / max(features - 1, 1))

    mean = jnp.sum(x, axis=-1, keepdims=True) * inv_n
    d = x - mean
    var = jnp.sum(d * d, axis=-1, keepdims=True) * inv_nm1   # unbiased, two-pass
    std = jnp.sqrt(var)
    inv = 1.0 / (std + jnp.float32(eps))                     # exact divide

    g = g_ref[...].astype(jnp.float32)
    b = b_ref[...].astype(jnp.float32)
    o_ref[...] = (g * (d * inv) + b).astype(o_ref.dtype)


def _layernorm_packed_kernel(x_ref, g_ref, b_ref, o_ref, *, eps, features, k):
    """Lane-packed path: k logical rows per kernel row (k * features == 128).

    Segment j of a kernel row occupies lanes [j*features, (j+1)*features).
    Per-segment statistics via masked full-lane reductions (VPU/XLU only,
    exact f32 — no MXU precision concerns), then lane-dense writeback.
    """
    x = x_ref[...].astype(jnp.float32)                     # (T, k*features)
    lane = jax.lax.broadcasted_iota(jnp.int32, x.shape, 1)

    inv_n = jnp.float32(1.0 / features)
    inv_nm1 = jnp.float32(1.0 / max(features - 1, 1))
    zero = jnp.float32(0.0)

    # Pass 1: per-segment mean, broadcast back onto that segment's lanes.
    mean_full = jnp.zeros_like(x)
    for j in range(k):
        m = (lane >= j * features) & (lane < (j + 1) * features)
        s1 = jnp.sum(jnp.where(m, x, zero), axis=-1, keepdims=True)
        mean_full = mean_full + jnp.where(m, s1 * inv_n, zero)

    d = x - mean_full
    d2 = d * d

    # Pass 2: per-segment unbiased std -> exact reciprocal, broadcast back.
    inv_full = jnp.zeros_like(x)
    for j in range(k):
        m = (lane >= j * features) & (lane < (j + 1) * features)
        s2 = jnp.sum(jnp.where(m, d2, zero), axis=-1, keepdims=True)
        std = jnp.sqrt(s2 * inv_nm1)
        inv_full = inv_full + jnp.where(m, 1.0 / (std + jnp.float32(eps)), zero)

    g = g_ref[...].astype(jnp.float32)                     # (1, k*features), a_2 tiled k times
    b = b_ref[...].astype(jnp.float32)
    o_ref[...] = (g * (d * inv_full) + b).astype(o_ref.dtype)


def _pick_tile_rows(rows, features, itemsize, *,
                    vmem_budget=44 * 1024 * 1024, max_rows=2048):
    """Largest sublane-aligned row tile fitting an explicit VMEM budget.

    Budget per tile row: 2x double-buffered input + 2x double-buffered output
    in the native dtype, plus ~3 f32 compute temporaries (upcast / centered /
    normalized).  44 MiB working set + 48 MiB vmem_limit fits every TPU
    generation including v7x's 64 MiB physical VMEM.
    """
    sublane = max(8, 32 // max(itemsize, 1))   # 8 f32, 16 bf16, 32 int8/fp8
    if rows <= sublane:
        return rows
    per_row = 4 * features * itemsize + 3 * features * 4
    by_vmem = max(vmem_budget // per_row, sublane)
    t = min(rows, max_rows, by_vmem)
    # Guarantee >= 2 grid blocks when possible so v7x's two TensorCores both
    # get work (essentially free on single-TC v5e/v6e: one extra ~0.35us step).
    t = min(t, max(rows // 2, sublane))
    t = (t // sublane) * sublane
    return max(min(t, rows), sublane)


def layernorm(x, a_2, b_2, eps=1e-6, *, tile_rows=None):
    """x: (..., features); a_2, b_2: (features,). Returns same shape/dtype as x."""
    orig_shape = x.shape
    features = orig_shape[-1]
    rows = int(math.prod(orig_shape[:-1])) if len(orig_shape) > 1 else 1
    x2d = x.reshape(rows, features)

    # Lane packing for narrow feature dims: k logical rows per 128-lane vreg row.
    k = 1
    if features < 128 and 128 % features == 0:
        k = 128 // features
        if k > 8 or rows % k != 0:
            k = 1  # fall back (tiny features or ragged row count)

    if k > 1:
        kern_rows, kern_feats = rows // k, k * features
        x2d = x2d.reshape(kern_rows, kern_feats)
        g = jnp.tile(a_2.reshape(-1), k).reshape(1, kern_feats)
        b = jnp.tile(b_2.reshape(-1), k).reshape(1, kern_feats)
        kernel = functools.partial(_layernorm_packed_kernel,
                                   eps=eps, features=features, k=k)
    else:
        kern_rows, kern_feats = rows, features
        g = a_2.reshape(1, kern_feats)
        b = b_2.reshape(1, kern_feats)
        kernel = functools.partial(_layernorm_kernel, eps=eps, features=features)

    itemsize = jnp.dtype(x.dtype).itemsize
    if tile_rows is None:
        tile_rows = _pick_tile_rows(kern_rows, kern_feats, itemsize)
    grid = (pl.cdiv(kern_rows, tile_rows),)

    out = pl.pallas_call(
        kernel,
        out_shape=jax.ShapeDtypeStruct((kern_rows, kern_feats), x.dtype),
        grid_spec=pltpu.PrefetchScalarGridSpec(
            num_scalar_prefetch=0,
            grid=grid,
            in_specs=[
                pl.BlockSpec((tile_rows, kern_feats), lambda i: (i, 0)),
                pl.BlockSpec((1, kern_feats), lambda i: (0, 0)),
                pl.BlockSpec((1, kern_feats), lambda i: (0, 0)),
            ],
            out_specs=pl.BlockSpec((tile_rows, kern_feats), lambda i: (i, 0)),
        ),
        compiler_params=pltpu.CompilerParams(
            dimension_semantics=("parallel",),
            vmem_limit_bytes=48 * 1024 * 1024,
        ),
    )(x2d, g, b)

    return out.reshape(orig_shape)


def _reference(x, a_2, b_2, eps):
    # Pure-JAX reference matching torch: unbiased std, denom is (std + eps).
    features = x.shape[-1]
    mean = jnp.mean(x, axis=-1, keepdims=True)
    var = jnp.sum((x - mean) ** 2, axis=-1, keepdims=True) / (features - 1)
    std = jnp.sqrt(var)
    return a_2 * (x - mean) / (std + eps) + b_2


if __name__ == "__main__":
    key = jax.random.PRNGKey(0)
    eps = 1e-6

    # --- Case 1: module-sized demo (exercises the lane-packed path, k=4) ---
    batch, seq, hidden = 2, 8, 32
    x = jax.random.normal(key, (batch, seq, hidden), dtype=jnp.float32)
    a_2 = jnp.ones((hidden,), dtype=jnp.float32)   # nn.Parameter(torch.ones)
    b_2 = jnp.zeros((hidden,), dtype=jnp.float32)  # nn.Parameter(torch.zeros)

    out = jax.block_until_ready(layernorm(x, a_2, b_2, eps))
    ref = _reference(x, a_2, b_2, eps)
    assert jnp.allclose(out, ref, atol=1e-5, rtol=1e-5), "mismatch vs reference (packed path)"

    # --- Case 2: wider hidden (exercises the plain path + multi-block grid),
    #             with a DC offset to confirm two-pass variance robustness ---
    hidden2 = 256
    x2 = jax.random.normal(jax.random.PRNGKey(1), (4, 16, hidden2), dtype=jnp.float32) + 2.5
    a2 = jnp.ones((hidden2,), dtype=jnp.float32)
    b2 = jnp.zeros((hidden2,), dtype=jnp.float32)

    out2 = jax.block_until_ready(layernorm(x2, a2, b2, eps))
    ref2 = _reference(x2, a2, b2, eps)
    assert jnp.allclose(out2, ref2, atol=1e-5, rtol=1e-5), "mismatch vs reference (plain path)"

    print("KERNEL_OK")
</pallas_src>

<mosaic_0001>
module attributes {stable_mosaic.version = 11 : i64} {
  func.func @_layernorm_packed_kernel(%arg0: i32, %arg1: memref<4x128xf32, #tpu.memory_space<vmem>>, %arg2: memref<1x128xf32, #tpu.memory_space<vmem>>, %arg3: memref<1x128xf32, #tpu.memory_space<vmem>>, %arg4: memref<4x128xf32, #tpu.memory_space<vmem>>) attributes {dimension_semantics = [#tpu.dimension_semantics<parallel>], iteration_bounds = array<i64: 1>, scalar_prefetch = 0 : i64, scratch_operands = 0 : i64, tpu.core_type = #tpu.core_type<tc>, window_params = [{transform_indices = @transform_0, window_bounds = array<i64: 4, 128>}, {pipeline_mode = #tpu.pipeline_mode<synchronous>, transform_indices = @transform_1, window_bounds = array<i64: 1, 128>}, {pipeline_mode = #tpu.pipeline_mode<synchronous>, transform_indices = @transform_2, window_bounds = array<i64: 1, 128>}, {transform_indices = @transform_3, window_bounds = array<i64: 4, 128>}]} {
    %c0 = arith.constant 0 : index
    %c0_0 = arith.constant 0 : index
    %0 = vector.load %arg1[%c0, %c0_0] : memref<4x128xf32, #tpu.memory_space<vmem>>, vector<4x128xf32>
    %1 = tpu.iota {dimensions = array<i32: 1>} : vector<4x128xi32>
    %cst = arith.constant 0.000000e+00 : f32
    %2 = vector.broadcast %cst : f32 to vector<4x128xf32>
    %c0_i32 = arith.constant 0 : i32
    %3 = vector.broadcast %c0_i32 : i32 to vector<4x128xi32>
    %4 = arith.cmpi sge, %1, %3 : vector<4x128xi32>
    %c32_i32 = arith.constant 32 : i32
    %5 = vector.broadcast %c32_i32 : i32 to vector<4x128xi32>
    %6 = arith.cmpi slt, %1, %5 : vector<4x128xi32>
    %7 = arith.andi %4, %6 : vector<4x128xi1>
    %cst_1 = arith.constant 0.000000e+00 : f32
    %8 = vector.broadcast %cst_1 : f32 to vector<4x128xf32>
    %9 = arith.select %7, %0, %8 : vector<4x128xi1>, vector<4x128xf32>
    %cst_2 = arith.constant dense<0.000000e+00> : vector<4xf32>
    %10 = vector.multi_reduction <add>, %9, %cst_2 [1] : vector<4x128xf32> to vector<4xf32>
    %11 = vector.shape_cast %10 : vector<4xf32> to vector<4x1xf32>
    %cst_3 = arith.constant 3.125000e-02 : f32
    %12 = vector.broadcast %cst_3 : f32 to vector<4x1xf32>
    %13 = arith.mulf %11, %12 : vector<4x1xf32>
    %cst_4 = arith.constant 0.000000e+00 : f32
    %14 = vector.shape_cast %13 : vector<4x1xf32> to vector<4x1xf32>
    %15 = vector.broadcast %14 : vector<4x1xf32> to vector<4x128xf32>
    %16 = vector.broadcast %cst_4 : f32 to vector<4x128xf32>
    %17 = arith.select %7, %15, %16 : vector<4x128xi1>, vector<4x128xf32>
    %18 = arith.addf %2, %17 : vector<4x128xf32>
    %c32_i32_5 = arith.constant 32 : i32
    %19 = vector.broadcast %c32_i32_5 : i32 to vector<4x128xi32>
    %20 = arith.cmpi sge, %1, %19 : vector<4x128xi32>
    %c64_i32 = arith.constant 64 : i32
    %21 = vector.broadcast %c64_i32 : i32 to vector<4x128xi32>
    %22 = arith.cmpi slt, %1, %21 : vector<4x128xi32>
    %23 = arith.andi %20, %22 : vector<4x128xi1>
    %cst_6 = arith.constant 0.000000e+00 : f32
    %24 = vector.broadcast %cst_6 : f32 to vector<4x128xf32>
    %25 = arith.select %23, %0, %24 : vector<4x128xi1>, vector<4x128xf32>
    %cst_7 = arith.constant dense<0.000000e+00> : vector<4xf32>
    %26 = vector.multi_reduction <add>, %25, %cst_7 [1] : vector<4x128xf32> to vector<4xf32>
    %27 = vector.shape_cast %26 : vector<4xf32> to vector<4x1xf32>
    %cst_8 = arith.constant 3.125000e-02 : f32
    %28 = vector.broadcast %cst_8 : f32 to vector<4x1xf32>
    %29 = arith.mulf %27, %28 : vector<4x1xf32>
    %cst_9 = arith.constant 0.000000e+00 : f32
    %30 = vector.shape_cast %29 : vector<4x1xf32> to vector<4x1xf32>
    %31 = vector.broadcast %30 : vector<4x1xf32> to vector<4x128xf32>
    %32 = vector.broadcast %cst_9 : f32 to vector<4x128xf32>
    %33 = arith.select %23, %31, %32 : vector<4x128xi1>, vector<4x128xf32>
    %34 = arith.addf %18, %33 : vector<4x128xf32>
    %c64_i32_10 = arith.constant 64 : i32
    %35 = vector.broadcast %c64_i32_10 : i32 to vector<4x128xi32>
    %36 = arith.cmpi sge, %1, %35 : vector<4x128xi32>
    %c96_i32 = arith.constant 96 : i32
    %37 = vector.broadcast %c96_i32 : i32 to vector<4x128xi32>
    %38 = arith.cmpi slt, %1, %37 : vector<4x128xi32>
    %39 = arith.andi %36, %38 : vector<4x128xi1>
    %cst_11 = arith.constant 0.000000e+00 : f32
    %40 = vector.broadcast %cst_11 : f32 to vector<4x128xf32>
    %41 = arith.select %39, %0, %40 : vector<4x128xi1>, vector<4x128xf32>
    %cst_12 = arith.constant dense<0.000000e+00> : vector<4xf32>
    %42 = vector.multi_reduction <add>, %41, %cst_12 [1] : vector<4x128xf32> to vector<4xf32>
    %43 = vector.shape_cast %42 : vector<4xf32> to vector<4x1xf32>
    %cst_13 = arith.constant 3.125000e-02 : f32
    %44 = vector.broadcast %cst_13 : f32 to vector<4x1xf32>
    %45 = arith.mulf %43, %44 : vector<4x1xf32>
    %cst_14 = arith.constant 0.000000e+00 : f32
    %46 = vector.shape_cast %45 : vector<4x1xf32> to vector<4x1xf32>
    %47 = vector.broadcast %46 : vector<4x1xf32> to vector<4x128xf32>
    %48 = vector.broadcast %cst_14 : f32 to vector<4x128xf32>
    %49 = arith.select %39, %47, %48 : vector<4x128xi1>, vector<4x128xf32>
    %50 = arith.addf %34, %49 : vector<4x128xf32>
    %c96_i32_15 = arith.constant 96 : i32
    %51 = vector.broadcast %c96_i32_15 : i32 to vector<4x128xi32>
    %52 = arith.cmpi sge, %1, %51 : vector<4x128xi32>
    %c128_i32 = arith.constant 128 : i32
    %53 = vector.broadcast %c128_i32 : i32 to vector<4x128xi32>
    %54 = arith.cmpi slt, %1, %53 : vector<4x128xi32>
    %55 = arith.andi %52, %54 : vector<4x128xi1>
    %cst_16 = arith.constant 0.000000e+00 : f32
    %56 = vector.broadcast %cst_16 : f32 to vector<4x128xf32>
    %57 = arith.select %55, %0, %56 : vector<4x128xi1>, vector<4x128xf32>
    %cst_17 = arith.constant dense<0.000000e+00> : vector<4xf32>
    %58 = vector.multi_reduction <add>, %57, %cst_17 [1] : vector<4x128xf32> to vector<4xf32>
    %59 = vector.shape_cast %58 : vector<4xf32> to vector<4x1xf32>
    %cst_18 = arith.constant 3.125000e-02 : f32
    %60 = vector.broadcast %cst_18 : f32 to vector<4x1xf32>
    %61 = arith.mulf %59, %60 : vector<4x1xf32>
    %cst_19 = arith.constant 0.000000e+00 : f32
    %62 = vector.shape_cast %61 : vector<4x1xf32> to vector<4x1xf32>
    %63 = vector.broadcast %62 : vector<4x1xf32> to vector<4x128xf32>
    %64 = vector.broadcast %cst_19 : f32 to vector<4x128xf32>
    %65 = arith.select %55, %63, %64 : vector<4x128xi1>, vector<4x128xf32>
    %66 = arith.addf %50, %65 : vector<4x128xf32>
    %67 = arith.subf %0, %66 : vector<4x128xf32>
    %68 = arith.mulf %67, %67 : vector<4x128xf32>
    %cst_20 = arith.constant 0.000000e+00 : f32
    %69 = vector.broadcast %cst_20 : f32 to vector<4x128xf32>
    %c0_i32_21 = arith.constant 0 : i32
    %70 = vector.broadcast %c0_i32_21 : i32 to vector<4x128xi32>
    %71 = arith.cmpi sge, %1, %70 : vector<4x128xi32>
    %c32_i32_22 = arith.constant 32 : i32
    %72 = vector.broadcast %c32_i32_22 : i32 to vector<4x128xi32>
    %73 = arith.cmpi slt, %1, %72 : vector<4x128xi32>
    %74 = arith.andi %71, %73 : vector<4x128xi1>
    %cst_23 = arith.constant 0.000000e+00 : f32
    %75 = vector.broadcast %cst_23 : f32 to vector<4x128xf32>
    %76 = arith.select %74, %68, %75 : vector<4x128xi1>, vector<4x128xf32>
    %cst_24 = arith.constant dense<0.000000e+00> : vector<4xf32>
    %77 = vector.multi_reduction <add>, %76, %cst_24 [1] : vector<4x128xf32> to vector<4xf32>
    %78 = vector.shape_cast %77 : vector<4xf32> to vector<4x1xf32>
    %cst_25 = arith.constant 0.0322580636 : f32
    %79 = vector.broadcast %cst_25 : f32 to vector<4x1xf32>
    %80 = arith.mulf %78, %79 : vector<4x1xf32>
    %81 = math.sqrt %80 : vector<4x1xf32>
    %cst_26 = arith.constant 9.99999997E-7 : f32
    %82 = vector.broadcast %cst_26 : f32 to vector<4x1xf32>
    %83 = arith.addf %81, %82 : vector<4x1xf32>
    %cst_27 = arith.constant 1.000000e+00 : f32
    %84 = vector.broadcast %cst_27 : f32 to vector<4x1xf32>
    %85 = arith.divf %84, %83 : vector<4x1xf32>
    %cst_28 = arith.constant 0.000000e+00 : f32
    %86 = vector.shape_cast %85 : vector<4x1xf32> to vector<4x1xf32>
    %87 = vector.broadcast %86 : vector<4x1xf32> to vector<4x128xf32>
    %88 = vector.broadcast %cst_28 : f32 to vector<4x128xf32>
    %89 = arith.select %74, %87, %88 : vector<4x128xi1>, vector<4x128xf32>
    %90 = arith.addf %69, %89 : vector<4x128xf32>
    %c32_i32_29 = arith.constant 32 : i32
    %91 = vector.broadcast %c32_i32_29 : i32 to vector<4x128xi32>
    %92 = arith.cmpi sge, %1, %91 : vector<4x128xi32>
    %c64_i32_30 = arith.constant 64 : i32
    %93 = vector.broadcast %c64_i32_30 : i32 to vector<4x128xi32>
    %94 = arith.cmpi slt, %1, %93 : vector<4x128xi32>
    %95 = arith.andi %92, %94 : vector<4x128xi1>
    %cst_31 = arith.constant 0.000000e+00 : f32
    %96 = vector.broadcast %cst_31 : f32 to vector<4x128xf32>
    %97 = arith.select %95, %68, %96 : vector<4x128xi1>, vector<4x128xf32>
    %cst_32 = arith.constant dense<0.000000e+00> : vector<4xf32>
    %98 = vector.multi_reduction <add>, %97, %cst_32 [1] : vector<4x128xf32> to vector<4xf32>
    %99 = vector.shape_cast %98 : vector<4xf32> to vector<4x1xf32>
    %cst_33 = arith.constant 0.0322580636 : f32
    %100 = vector.broadcast %cst_33 : f32 to vector<4x1xf32>
    %101 = arith.mulf %99, %100 : vector<4x1xf32>
    %102 = math.sqrt %101 : vector<4x1xf32>
    %cst_34 = arith.constant 9.99999997E-7 : f32
    %103 = vector.broadcast %cst_34 : f32 to vector<4x1xf32>
    %104 = arith.addf %102, %103 : vector<4x1xf32>
    %cst_35 = arith.constant 1.000000e+00 : f32
    %105 = vector.broadcast %cst_35 : f32 to vector<4x1xf32>
    %106 = arith.divf %105, %104 : vector<4x1xf32>
    %cst_36 = arith.constant 0.000000e+00 : f32
    %107 = vector.shape_cast %106 : vector<4x1xf32> to vector<4x1xf32>
    %108 = vector.broadcast %107 : vector<4x1xf32> to vector<4x128xf32>
    %109 = vector.broadcast %cst_36 : f32 to vector<4x128xf32>
    %110 = arith.select %95, %108, %109 : vector<4x128xi1>, vector<4x128xf32>
    %111 = arith.addf %90, %110 : vector<4x128xf32>
    %c64_i32_37 = arith.constant 64 : i32
    %112 = vector.broadcast %c64_i32_37 : i32 to vector<4x128xi32>
    %113 = arith.cmpi sge, %1, %112 : vector<4x128xi32>
    %c96_i32_38 = arith.constant 96 : i32
    %114 = vector.broadcast %c96_i32_38 : i32 to vector<4x128xi32>
    %115 = arith.cmpi slt, %1, %114 : vector<4x128xi32>
    %116 = arith.andi %113, %115 : vector<4x128xi1>
    %cst_39 = arith.constant 0.000000e+00 : f32
    %117 = vector.broadcast %cst_39 : f32 to vector<4x128xf32>
    %118 = arith.select %116, %68, %117 : vector<4x128xi1>, vector<4x128xf32>
    %cst_40 = arith.constant dense<0.000000e+00> : vector<4xf32>
    %119 = vector.multi_reduction <add>, %118, %cst_40 [1] : vector<4x128xf32> to vector<4xf32>
    %120 = vector.shape_cast %119 : vector<4xf32> to vector<4x1xf32>
    %cst_41 = arith.constant 0.0322580636 : f32
    %121 = vector.broadcast %cst_41 : f32 to vector<4x1xf32>
    %122 = arith.mulf %120, %121 : vector<4x1xf32>
    %123 = math.sqrt %122 : vector<4x1xf32>
    %cst_42 = arith.constant 9.99999997E-7 : f32
    %124 = vector.broadcast %cst_42 : f32 to vector<4x1xf32>
    %125 = arith.addf %123, %124 : vector<4x1xf32>
    %cst_43 = arith.constant 1.000000e+00 : f32
    %126 = vector.broadcast %cst_43 : f32 to vector<4x1xf32>
    %127 = arith.divf %126, %125 : vector<4x1xf32>
    %cst_44 = arith.constant 0.000000e+00 : f32
    %128 = vector.shape_cast %127 : vector<4x1xf32> to vector<4x1xf32>
    %129 = vector.broadcast %128 : vector<4x1xf32> to vector<4x128xf32>
    %130 = vector.broadcast %cst_44 : f32 to vector<4x128xf32>
    %131 = arith.select %116, %129, %130 : vector<4x128xi1>, vector<4x128xf32>
    %132 = arith.addf %111, %131 : vector<4x128xf32>
    %c96_i32_45 = arith.constant 96 : i32
    %133 = vector.broadcast %c96_i32_45 : i32 to vector<4x128xi32>
    %134 = arith.cmpi sge, %1, %133 : vector<4x128xi32>
    %c128_i32_46 = arith.constant 128 : i32
    %135 = vector.broadcast %c128_i32_46 : i32 to vector<4x128xi32>
    %136 = arith.cmpi slt, %1, %135 : vector<4x128xi32>
    %137 = arith.andi %134, %136 : vector<4x128xi1>
    %cst_47 = arith.constant 0.000000e+00 : f32
    %138 = vector.broadcast %cst_47 : f32 to vector<4x128xf32>
    %139 = arith.select %137, %68, %138 : vector<4x128xi1>, vector<4x128xf32>
    %cst_48 = arith.constant dense<0.000000e+00> : vector<4xf32>
    %140 = vector.multi_reduction <add>, %139, %cst_48 [1] : vector<4x128xf32> to vector<4xf32>
    %141 = vector.shape_cast %140 : vector<4xf32> to vector<4x1xf32>
    %cst_49 = arith.constant 0.0322580636 : f32
    %142 = vector.broadcast %cst_49 : f32 to vector<4x1xf32>
    %143 = arith.mulf %141, %142 : vector<4x1xf32>
    %144 = math.sqrt %143 : vector<4x1xf32>
    %cst_50 = arith.constant 9.99999997E-7 : f32
    %145 = vector.broadcast %cst_50 : f32 to vector<4x1xf32>
    %146 = arith.addf %144, %145 : vector<4x1xf32>
    %cst_51 = arith.constant 1.000000e+00 : f32
    %147 = vector.broadcast %cst_51 : f32 to vector<4x1xf32>
    %148 = arith.divf %147, %146 : vector<4x1xf32>
    %cst_52 = arith.constant 0.000000e+00 : f32
    %149 = vector.shape_cast %148 : vector<4x1xf32> to vector<4x1xf32>
    %150 = vector.broadcast %149 : vector<4x1xf32> to vector<4x128xf32>
    %151 = vector.broadcast %cst_52 : f32 to vector<4x128xf32>
    %152 = arith.select %137, %150, %151 : vector<4x128xi1>, vector<4x128xf32>
    %153 = arith.addf %132, %152 : vector<4x128xf32>
    %c0_53 = arith.constant 0 : index
    %c0_54 = arith.constant 0 : index
    %154 = vector.load %arg2[%c0_53, %c0_54] : memref<1x128xf32, #tpu.memory_space<vmem>>, vector<1x128xf32>
    %c0_55 = arith.constant 0 : index
    %c0_56 = arith.constant 0 : index
    %155 = vector.load %arg3[%c0_55, %c0_56] : memref<1x128xf32, #tpu.memory_space<vmem>>, vector<1x128xf32>
    %156 = arith.mulf %67, %153 : vector<4x128xf32>
    %157 = vector.broadcast %154 : vector<1x128xf32> to vector<4x128xf32>
    %158 = arith.mulf %157, %156 : vector<4x128xf32>
    %159 = vector.broadcast %155 : vector<1x128xf32> to vector<4x128xf32>
    %160 = arith.addf %158, %159 : vector<4x128xf32>
    %c0_57 = arith.constant 0 : index
    %c0_58 = arith.constant 0 : index
    %161 = vector.load %arg4[%c0_57, %c0_58] : memref<4x128xf32, #tpu.memory_space<vmem>>, vector<4x128xf32>
    tpu.vector_store %arg4[%c0_57, %c0_58], %160 {strides = array<i32>} : memref<4x128xf32, #tpu.memory_space<vmem>>, vector<4x128xf32>,
    return
  }
  func.func @transform_0(%arg0: i32) -> (i32, i32) {
    %c0_i32 = arith.constant 0 : i32
    %c0_i32_0 = arith.constant 0 : i32
    return %arg0, %c0_i32 : i32, i32
  }
  func.func @transform_1(%arg0: i32) -> (i32, i32) {
    %c0_i32 = arith.constant 0 : i32
    %c0_i32_0 = arith.constant 0 : i32
    %c0_i32_1 = arith.constant 0 : i32
    return %c0_i32, %c0_i32_0 : i32, i32
  }
  func.func @transform_2(%arg0: i32) -> (i32, i32) {
    %c0_i32 = arith.constant 0 : i32
    %c0_i32_0 = arith.constant 0 : i32
    %c0_i32_1 = arith.constant 0 : i32
    return %c0_i32, %c0_i32_0 : i32, i32
  }
  func.func @transform_3(%arg0: i32) -> (i32, i32) {
    %c0_i32 = arith.constant 0 : i32
    %c0_i32_0 = arith.constant 0 : i32
    return %arg0, %c0_i32 : i32, i32
  }
}

</mosaic_0001>

<bundles_post_ra>
// kernel: tpu_custom_call.1
= control target key start
LH: loop header
LB: loop body
LE: loop exit
PB: predicated region body
PF: predicated region fallthrough
CT: control target
= control target key end

     0   :  { %8 = vsyncpa [#allocation3], 0  ;;  %s355_s0 = inlined_call_operand.hbm [shape: f32[4,128], index: 0, kind: input, shape index: {}]   ;;  %s356_s1 = inlined_call_operand.vmem [shape: f32[1,128], index: 1, kind: input, shape index: {}]   ;;  %s357_s2 = inlined_call_operand.vmem [shape: f32[1,128], index: 2, kind: input, shape index: {}]   ;;  %s358_s3 = inlined_call_operand.hbm [shape: f32[4,128], index: 3, kind: output, shape index: {}]  }
   0x1   :  { %9 = vsyncpa [#allocation4], 0  ;;  %s242_s12 = smov [#allocation2]   ;;  %s194_s16 = scalar_lea.hbm %s355_s0, 64 }
   0x2   :  { %s16_s13 = sshll.u32 %s242_s12, 4  ;;  %p195_p0 = scmp.ne.s32.totalorder %s355_s0, %s194_s16  ;;  %s17_s13 = int_to_ptr.vmem [resolvable:$true] %s16_s13 }
   0x3   :  { %p198_p1 = scmp.lt.u32.totalorder %s194_s16, %s355_s0 }
   0x5   :  { %p200_p2 = pnand %p198_p1, %p195_p0 }
   0x7   :  { %203 = shalt.err (!%p200_p2)
}
   0x8   :  { %s204_s21 = scalar_lea.vmem %s17_s13, 64  ;;  %p209_p4 = scmp.lt.s32.totalorder %s17_s13, %s17_s13 }
   0x9   :  { %p205_p3 = scmp.ne.s32.totalorder %s17_s13, %s204_s21  ;;  %p210_p5 = scmp.lt.s32.totalorder %s204_s21, %s204_s21 }
   0xb   :  { %p211_p6 = por %p210_p5, %p209_p4 }
   0xd   :  { %p212_p7 = pnand %p211_p6, %p205_p3 }
   0xf   :  { %215 = shalt.err (!%p212_p7)
}
  0x10   :  { %19 = dma.hbm_to_vmem [thread:$0]  %s355_s0, 64, %s17_s13, [#allocation3]  }
  0x11   :  { %238 = dma.done.wait [#allocation3], 64  }
  0x12   :  { %239 = vsyncadd [#allocation3], 4294967232  ;;  %v28_v0 = vlaneseq  ;;  %vm34_vm7 = vcmask 1043456   ;;  %v27_v4 = vld [vmem:[#allocation2] sm:$0xf]  ;;  %s243_s27 = smov [#allocation5]  }
  0x13   :  { %v175_v3 = vld [vmem:[%s357_s2] ss:$0 sm:$0xff]  ;;  %s165_s28 = sshll.u32 %s243_s27, 4  ;;  %s166_s28 = int_to_ptr.vmem [resolvable:$true] %s165_s28 }
  0x14   :  { %v276_v1 = vand.u32 127, %v28_v0  ;;  %s216_s29 = scalar_lea.vmem %s166_s28, 64  ;;  %p221_p9 = scmp.lt.s32.totalorder %s166_s28, %s166_s28 }
  0x15   :  { %p217_p8 = scmp.ne.s32.totalorder %s166_s28, %s216_s29  ;;  %p222_p10 = scmp.lt.s32.totalorder %s216_s29, %s216_s29 }
  0x16   :  { %vm51_vm0 = vcmp.ge.s32.totalorder %v276_v1, 64  ;;  %vm52_vm1 = vcmp.lt.s32.totalorder %v276_v1, 96  ;;  %vm41_vm2 = vcmp.ge.s32.totalorder %v276_v1, 32  ;;  %vm31_vm3 = vcmp.lt.s32.totalorder %v276_v1, 32 }
  0x17   :  { %vm282_vm4 = vmand %vm51_vm0, %vm52_vm1  ;;  %vm42_vm5 = vcmp.lt.s32.totalorder %v276_v1, 64  ;;  %vm61_vm6 = vcmp.ge.s32.totalorder %v276_v1, 96  ;;  %v33_v5 = vsel %vm31_vm3, %v27_v4, 0.0  ;;  %p223_p11 = por %p222_p10, %p221_p9 }
  0x18   :  { %vm288_vm8 = vmand %vm41_vm2, %vm42_vm5  ;;  %v54_v6 = vsel %vm282_vm4, %v27_v4, 0.0  ;;  %v64_v8 = vsel %vm61_vm6, %v27_v4, 0.0  ;;  %v35_v9 = vsel %vm34_vm7, %v33_v5, 0.0 }
  0x19   :  { %v44_v7 = vsel %vm288_vm8, %v27_v4, 0.0  ;;  %v55_v10 = vsel %vm34_vm7, %v54_v6, 0.0  ;;  %36 = vadd.xlane.f32.xlu0 %v35_v9  ;;  %v65_v12 = vsel %vm34_vm7, %v64_v8, 0.0  ;;  %p224_p12 = pnand %p223_p11, %p217_p8 }
  0x1a   :  { %56 = vadd.xlane.f32.xlu1 %v55_v10  ;;  %v45_v11 = vsel %vm34_vm7, %v44_v7, 0.0 }
  0x1d   :  { %46 = vadd.xlane.f32.xlu0 %v45_v11 }
  0x1e   :  { %66 = vadd.xlane.f32.xlu1 %v65_v12 }
  0xa6   :  { %v37_v13 = vpop.xlane.xlu0 %36 }
  0xa7   :  { %v57_v14 = vpop.xlane.xlu1 %56  ;;  %v38_v15 = vmul.f32 0.03125, %v37_v13 }
  0xa8   :  { %v58_v18 = vmul.f32 0.03125, %v57_v14 }
  0xa9   :  { %v39_v21 = vsel %vm31_vm3, %v38_v15, 0.0 }
  0xaa   :  { %v47_v16 = vpop.xlane.xlu0 %46  ;;  %v59_v24 = vsel %vm282_vm4, %v58_v18, 0.0 }
  0xab   :  { %v67_v17 = vpop.xlane.xlu1 %66  ;;  %v48_v19 = vmul.f32 0.03125, %v47_v16 }
  0xac   :  { %v68_v20 = vmul.f32 0.03125, %v67_v17 }
  0xad   :  { %v49_v22 = vsel %vm288_vm8, %v48_v19, 0.0 }
  0xae   :  { %v50_v23 = vadd.f32 %v49_v22, %v39_v21  ;;  %v69_v25 = vsel %vm61_vm6, %v68_v20, 0.0  ;;  %v174_v20 = vld [vmem:[%s356_s1] ss:$0 sm:$0xff] }
  0xb0   :  { %v60_v26 = vadd.f32 %v59_v24, %v50_v23 }
  0xb2   :  { %v70_v27 = vadd.f32 %v69_v25, %v60_v26 }
  0xb4   :  { %v312_v28 = vsub.f32 %v27_v4, %v70_v27 }
  0xb6   :  { %v72_v29 = vmul.f32 %v312_v28, %v312_v28 }
  0xb8   :  { %v90_v30 = vsel %vm288_vm8, %v72_v29, 0.0  ;;  %v73_v31 = vsel %vm31_vm3, %v72_v29, 0.0  ;;  %v124_v34 = vsel %vm61_vm6, %v72_v29, 0.0  ;;  %v107_v35 = vsel %vm282_vm4, %v72_v29, 0.0 }
  0xb9   :  { %v91_v32 = vsel %vm34_vm7, %v90_v30, 0.0  ;;  %v74_v33 = vsel %vm34_vm7, %v73_v31, 0.0  ;;  %v125_v36 = vsel %vm34_vm7, %v124_v34, 0.0  ;;  %v108_v37 = vsel %vm34_vm7, %v107_v35, 0.0 }
  0xba   :  { %92 = vadd.xlane.f32.xlu1 %v91_v32  ;;  %75 = vadd.xlane.f32.xlu0 %v74_v33 }
  0xbe   :  { %126 = vadd.xlane.f32.xlu1 %v125_v36  ;;  %109 = vadd.xlane.f32.xlu0 %v108_v37 }
 0x147   :  { %v93_v38 = vpop.xlane.xlu1 %92  ;;  %v76_v39 = vpop.xlane.xlu0 %75 }
 0x148   :  { %v94_v40 = vmul.f32 0.032258064, %v93_v38  ;;  %v77_v41 = vmul.f32 0.032258064, %v76_v39 }
 0x14a   :  { %178 = vrsqrt.f32 %v94_v40  ;;  %vm97_vm9 = vcmp.eq.f32.partialorder %v94_v40, inf  ;;  %v100_v49 = vand.u32 2147483648, %v94_v40  ;;  %vm99_vm10 = vcmp.eq.f32.partialorder %v94_v40, 0.0 }
 0x14b   :  { %180 = vrsqrt.f32 %v77_v41  ;;  %v127_v42 = vpop.xlane.xlu1 %126  ;;  %v110_v43 = vpop.xlane.xlu0 %109  ;;  %vm80_vm11 = vcmp.eq.f32.partialorder %v77_v41, inf  ;;  %v83_v52 = vand.u32 2147483648, %v77_v41  ;;  %vm82_vm12 = vcmp.eq.f32.partialorder %v77_v41, 0.0 }
 0x14c   :  { %v128_v44 = vmul.f32 0.032258064, %v127_v42  ;;  %v111_v45 = vmul.f32 0.032258064, %v110_v43 }
 0x14e   :  { %182 = vrsqrt.f32 %v128_v44  ;;  %vm131_vm13 = vcmp.eq.f32.partialorder %v128_v44, inf  ;;  %vm133_vm14 = vcmp.eq.f32.partialorder %v128_v44, 0.0  ;;  %v134_v61 = vand.u32 2147483648, %v128_v44 }
 0x14f   :  { %184 = vrsqrt.f32 %v111_v45  ;;  %vm114_vm15 = vcmp.eq.f32.partialorder %v111_v45, inf  ;;  %v117_v0 = vand.u32 2147483648, %v111_v45  ;;  %vm116_vm0 = vcmp.eq.f32.partialorder %v111_v45, 0.0 }
 0x154   :  { %v179_v46 = vpop.eup %178 }
 0x155   :  { %v181_v47 = vpop.eup %180  ;;  %v96_v48 = vmul.f32 %v179_v46, %v94_v40 }
 0x156   :  { %v79_v50 = vmul.f32 %v181_v47, %v77_v41 }
 0x157   :  { %v98_v51 = vsel %vm97_vm9, %v94_v40, %v96_v48 }
 0x158   :  { %v183_v53 = vpop.eup %182  ;;  %v101_v54 = vsel %vm99_vm10, %v100_v49, %v98_v51  ;;  %v81_v55 = vsel %vm80_vm11, %v77_v41, %v79_v50 }
 0x159   :  { %v185_v56 = vpop.eup %184  ;;  %v102_v57 = vadd.f32 1e-06, %v101_v54  ;;  %v84_v58 = vsel %vm82_vm12, %v83_v52, %v81_v55  ;;  %v130_v59 = vmul.f32 %v183_v53, %v128_v44 }
 0x15a   :  { %v85_v60 = vadd.f32 1e-06, %v84_v58  ;;  %v113_v62 = vmul.f32 %v185_v56, %v111_v45 }
 0x15b   :  { %186 = vrcp.f32 %v102_v57  ;;  %v132_v63 = vsel %vm131_vm13, %v128_v44, %v130_v59 }
 0x15c   :  { %188 = vrcp.f32 %v85_v60  ;;  %v135_v4 = vsel %vm133_vm14, %v134_v61, %v132_v63  ;;  %v115_v5 = vsel %vm114_vm15, %v111_v45, %v113_v62 }
 0x15d   :  { %v136_v6 = vadd.f32 1e-06, %v135_v4  ;;  %v118_v7 = vsel %vm116_vm0, %v117_v0, %v115_v5 }
 0x15e   :  { %v119_v8 = vadd.f32 1e-06, %v118_v7 }
 0x15f   :  { %190 = vrcp.f32 %v136_v6 }
 0x160   :  { %192 = vrcp.f32 %v119_v8 }
 0x165   :  { %v187_v9 = vpop.eup %186 }
 0x166   :  { %v189_v10 = vpop.eup %188  ;;  %v105_v12 = vsel %vm288_vm8, %v187_v9, 0.0 }
 0x167   :  { %v88_v11 = vsel %vm31_vm3, %v189_v10, 0.0 }
 0x168   :  { %v106_v15 = vadd.f32 %v105_v12, %v88_v11 }
 0x169   :  { %v191_v13 = vpop.eup %190 }
 0x16a   :  { %v193_v14 = vpop.eup %192  ;;  %v139_v18 = vsel %vm61_vm6, %v191_v13, 0.0 }
 0x16b   :  { %v122_v16 = vsel %vm282_vm4, %v193_v14, 0.0 }
 0x16c   :  { %v123_v17 = vadd.f32 %v122_v16, %v106_v15 }
 0x16e   :  { %v140_v19 = vadd.f32 %v139_v18, %v123_v17 }
 0x170   :  { %v143_v21 = vmul.f32 %v140_v19, %v312_v28 }
 0x172   :  { %v150_v22 = vmul.f32 %v174_v20, %v143_v21 }
 0x174   :  { %v157_v2 = vadd.f32 %v175_v3, %v150_v22 }
 0x176   :  { %158 = vst [vmem:[#allocation5] sm:$0xf] %v157_v2 }
 0x177   :  { %227 = shalt.err (!%p224_p12)
}
 0x178   :  { %s228_s4 = scalar_lea.hbm %s358_s3, 64 }
 0x179   :  { %p229_p13 = scmp.ne.s32.totalorder %s358_s3, %s228_s4  ;;  %p232_p0 = scmp.lt.u32.totalorder %s228_s4, %s358_s3 }
 0x17b   :  { %p234_p1 = pnand %p232_p0, %p229_p13 }
 0x17d   :  { %237 = shalt.err (!%p234_p1)
}
 0x17e   :  { %168 = dma.vmem_to_hbm [thread:$0]  %s166_s28, 64, %s358_s3, [#allocation4]  }
 0x17f   :  { %240 = dma.done.wait [#allocation4], 64  }
 0x180   :  { %241 = vsyncadd [#allocation4], 4294967232 }
 0x181   :  { %172 = vsyncpa [#allocation3], 1 }
 0x182   :  { %173 = vsyncpa [#allocation4], 1 }

</bundles_post_ra>
